<compile_context>
chip_gen: v6e
topology: v6e:2x2x1
jax: 0.10.0
libtpu: 0.0.40
codegen_flags: <defaults>
</compile_context>

<pallas_src>
import jax
import jax.numpy as jnp
from jax.experimental import pallas as pl
from jax.experimental.pallas import tpu as pltpu


# Total pipelined VMEM (x + out, double-buffered) allowed per pallas_call.
# Kept well under the smallest default scoped VMEM limit (16 MiB on v5e).
_VMEM_BUDGET_BYTES = 8 * 1024 * 1024
# Try to move at least ~1 MiB of useful payload per grid step.
_TARGET_STEP_BYTES = 1 * 1024 * 1024


def _outconv_kernel(x_ref, w_ref, b_ref, o_ref):
    """out[n, o, ...] = sum_c w[o, c] * x[n, c, ...] + b[o].

    x_ref : (Nb, Cin, ...)  VMEM, lane-dense spatial trailing dims
    w_ref : (Cout, Cin)     SMEM (scalar reads)
    b_ref : (Cout,)         SMEM (scalar reads)
    o_ref : (Nb, Cout, ...) VMEM
    """
    cout, cin = w_ref.shape
    # Load each input channel once; each is a full (8,128)-packed slab.
    xs = [x_ref[:, c].astype(jnp.float32) for c in range(cin)]
    for o in range(cout):
        # Scalar-splat multiply-accumulate on the VPU (no MXU, no lane bcast).
        acc = xs[0] * w_ref[o, 0] + b_ref[o]
        for c in range(1, cin):
            acc = acc + xs[c] * w_ref[o, c]
        o_ref[:, o] = acc.astype(o_ref.dtype)


def _packed_tiling(n, cin, cout, s):
    """Pick (nb, tms, n_sblocks) for the (N, C, S, 128) packed layout."""
    # Pipelined VMEM per sublane-row per step: x + out, double-buffered.
    bytes_per_row = (cin + cout) * 4 * 128 * 2
    max_rows = max(8, (_VMEM_BUDGET_BYTES // bytes_per_row) // 8 * 8)

    if s <= max_rows:
        tms = s                      # full spatial extent (always legal block)
        nb = 1
        per_img = (cin + cout) * 4 * s * 128
        for d in range(1, n + 1):    # batch images until a step is ~1 MiB
            if n % d != 0 or d * s > max_rows:
                continue
            nb = d
            if d * per_img >= _TARGET_STEP_BYTES:
                break
        return nb, tms, 1

    # Spatial axis tiled: prefer a multiple-of-8 tile that divides S exactly
    # (unmasked stores everywhere); otherwise largest multiple of 8 with a
    # masked tail block.
    t = max_rows
    while t >= 8:
        if s % t == 0:
            return 1, t, s // t
        t -= 8
    return 1, max_rows, pl.cdiv(s, max_rows)


def _flat_tiling(cin, cout, hw):
    """Pick (tm, n_mblocks) for the ragged (N, C, HW) fallback layout."""
    bytes_per_elem = (cin + cout) * 4 * 2
    max_tm = max(128, (_VMEM_BUDGET_BYTES // bytes_per_elem) // 128 * 128)
    if hw <= max_tm:
        return hw, 1                 # full extent: always a legal block
    t = max_tm
    while t >= 128:
        if hw % t == 0:
            return t, hw // t
        t -= 128
    return max_tm, pl.cdiv(hw, max_tm)   # masked tail block


def outconv_pallas(x_nchw, weight, bias):
    """1x1 Conv2d (OutConv) forward.

    x_nchw : (N, Cin, H, W)
    weight : (Cout, Cin, 1, 1) (PyTorch Conv2d weight layout)
    bias   : (Cout,)
    returns: (N, Cout, H, W)
    """
    N, Cin, H, W = x_nchw.shape
    Cout = weight.shape[0]
    HW = H * W

    w2 = weight.reshape(Cout, Cin)
    b1 = bias.reshape(Cout)
    smem_spec = pl.BlockSpec(memory_space=pltpu.MemorySpace.SMEM)

    if HW % 128 == 0:
        # Packed layout: spatial axis -> (sublane, lane) = (HW//128, 128).
        S = HW // 128
        x4 = x_nchw.reshape(N, Cin, S, 128)          # free view, no copy
        nb, tms, n_sb = _packed_tiling(N, Cin, Cout, S)
        grid = (N // nb, n_sb)
        # TODO(synk): if a v7x trace still shows exposed DMA at step starts,
        # sweep pipeline_mode=pl.Buffered(3) on the x BlockSpec.
        out4 = pl.pallas_call(
            _outconv_kernel,
            out_shape=jax.ShapeDtypeStruct((N, Cout, S, 128), x_nchw.dtype),
            grid=grid,
            in_specs=[
                pl.BlockSpec((nb, Cin, tms, 128), lambda n, m: (n, 0, m, 0)),
                smem_spec,
                smem_spec,
            ],
            out_specs=pl.BlockSpec((nb, Cout, tms, 128),
                                   lambda n, m: (n, 0, m, 0)),
            compiler_params=pltpu.CompilerParams(
                dimension_semantics=("parallel", "parallel")),
        )(x4, w2, b1)
        return out4.reshape(N, Cout, H, W)

    # Ragged H*W fallback: lane-dense (N, Cin, HW), capped tile, masked tail.
    x3 = x_nchw.reshape(N, Cin, HW)
    tm, n_mb = _flat_tiling(Cin, Cout, HW)
    grid = (N, n_mb)
    out3 = pl.pallas_call(
        _outconv_kernel,
        out_shape=jax.ShapeDtypeStruct((N, Cout, HW), x_nchw.dtype),
        grid=grid,
        in_specs=[
            pl.BlockSpec((1, Cin, tm), lambda n, m: (n, 0, m)),
            smem_spec,
            smem_spec,
        ],
        out_specs=pl.BlockSpec((1, Cout, tm), lambda n, m: (n, 0, m)),
        compiler_params=pltpu.CompilerParams(
            dimension_semantics=("parallel", "parallel")),
    )(x3, w2, b1)
    return out3.reshape(N, Cout, H, W)


if __name__ == "__main__":
    key = jax.random.PRNGKey(0)
    k_x, k_w, k_b = jax.random.split(key, 3)

    N, Cin, H, W = 2, 4, 16, 16
    Cout = 3

    x = jax.random.normal(k_x, (N, Cin, H, W), dtype=jnp.float32)
    # Deterministic synthetic params (shapes match nn.Conv2d(Cin, Cout, 1)).
    bound = 1.0 / (Cin ** 0.5)
    weight = jax.random.uniform(k_w, (Cout, Cin, 1, 1), minval=-bound,
                                maxval=bound, dtype=jnp.float32)
    bias = jax.random.uniform(k_b, (Cout,), minval=-bound, maxval=bound,
                              dtype=jnp.float32)

    y = outconv_pallas(x, weight, bias)
    y = jax.block_until_ready(y)

    # Reference: plain-JAX 1x1 conv semantics (f32, highest precision).
    ref = jnp.einsum("nchw,oc->nohw", x, weight.reshape(Cout, Cin),
                     precision=jax.lax.Precision.HIGHEST) \
        + bias.reshape(1, Cout, 1, 1)
    assert y.shape == (N, Cout, H, W)
    assert jnp.allclose(y, ref, atol=1e-5, rtol=1e-5)

    print("KERNEL_OK")
</pallas_src>

<mosaic_0001>
module attributes {stable_mosaic.version = 11 : i64} {
  func.func @_outconv_kernel(%arg0: i32, %arg1: i32, %arg2: memref<2x4x2x128xf32, #tpu.memory_space<vmem>>, %arg3: memref<3x4xf32, #tpu.memory_space<smem>>, %arg4: memref<3xf32, #tpu.memory_space<smem>>, %arg5: memref<2x3x2x128xf32, #tpu.memory_space<vmem>>) attributes {dimension_semantics = [#tpu.dimension_semantics<parallel>, #tpu.dimension_semantics<parallel>], iteration_bounds = array<i64: 1, 1>, scalar_prefetch = 0 : i64, scratch_operands = 0 : i64, tpu.core_type = #tpu.core_type<tc>, window_params = [{transform_indices = @transform_0, window_bounds = array<i64: 2, 4, 2, 128>}, {transform_indices = @transform_1, window_bounds = array<i64: 3, 4>}, {transform_indices = @transform_2, window_bounds = array<i64: 3>}, {transform_indices = @transform_3, window_bounds = array<i64: 2, 3, 2, 128>}]} {
    %c0 = arith.constant 0 : index
    %c0_0 = arith.constant 0 : index
    %c0_1 = arith.constant 0 : index
    %c0_2 = arith.constant 0 : index
    %0 = vector.load %arg2[%c0, %c0_0, %c0_1, %c0_2] : memref<2x4x2x128xf32, #tpu.memory_space<vmem>>, vector<2x1x2x128xf32>
    %1 = vector.shape_cast %0 : vector<2x1x2x128xf32> to vector<2x2x128xf32>
    %c0_3 = arith.constant 0 : index
    %c1 = arith.constant 1 : index
    %c0_4 = arith.constant 0 : index
    %c0_5 = arith.constant 0 : index
    %2 = vector.load %arg2[%c0_3, %c1, %c0_4, %c0_5] : memref<2x4x2x128xf32, #tpu.memory_space<vmem>>, vector<2x1x2x128xf32>
    %3 = vector.shape_cast %2 : vector<2x1x2x128xf32> to vector<2x2x128xf32>
    %c0_6 = arith.constant 0 : index
    %c2 = arith.constant 2 : index
    %c0_7 = arith.constant 0 : index
    %c0_8 = arith.constant 0 : index
    %4 = vector.load %arg2[%c0_6, %c2, %c0_7, %c0_8] : memref<2x4x2x128xf32, #tpu.memory_space<vmem>>, vector<2x1x2x128xf32>
    %5 = vector.shape_cast %4 : vector<2x1x2x128xf32> to vector<2x2x128xf32>
    %c0_9 = arith.constant 0 : index
    %c3 = arith.constant 3 : index
    %c0_10 = arith.constant 0 : index
    %c0_11 = arith.constant 0 : index
    %6 = vector.load %arg2[%c0_9, %c3, %c0_10, %c0_11] : memref<2x4x2x128xf32, #tpu.memory_space<vmem>>, vector<2x1x2x128xf32>
    %7 = vector.shape_cast %6 : vector<2x1x2x128xf32> to vector<2x2x128xf32>
    %c0_12 = arith.constant 0 : index
    %c0_13 = arith.constant 0 : index
    %8 = memref.load %arg3[%c0_12, %c0_13] : memref<3x4xf32, #tpu.memory_space<smem>>
    %9 = vector.broadcast %8 : f32 to vector<2x2x128xf32>
    %10 = arith.mulf %1, %9 : vector<2x2x128xf32>
    %c0_14 = arith.constant 0 : index
    %11 = memref.load %arg4[%c0_14] : memref<3xf32, #tpu.memory_space<smem>>
    %12 = vector.broadcast %11 : f32 to vector<2x2x128xf32>
    %13 = arith.addf %10, %12 : vector<2x2x128xf32>
    %c0_15 = arith.constant 0 : index
    %c1_16 = arith.constant 1 : index
    %14 = memref.load %arg3[%c0_15, %c1_16] : memref<3x4xf32, #tpu.memory_space<smem>>
    %15 = vector.broadcast %14 : f32 to vector<2x2x128xf32>
    %16 = arith.mulf %3, %15 : vector<2x2x128xf32>
    %17 = arith.addf %13, %16 : vector<2x2x128xf32>
    %c0_17 = arith.constant 0 : index
    %c2_18 = arith.constant 2 : index
    %18 = memref.load %arg3[%c0_17, %c2_18] : memref<3x4xf32, #tpu.memory_space<smem>>
    %19 = vector.broadcast %18 : f32 to vector<2x2x128xf32>
    %20 = arith.mulf %5, %19 : vector<2x2x128xf32>
    %21 = arith.addf %17, %20 : vector<2x2x128xf32>
    %c0_19 = arith.constant 0 : index
    %c3_20 = arith.constant 3 : index
    %22 = memref.load %arg3[%c0_19, %c3_20] : memref<3x4xf32, #tpu.memory_space<smem>>
    %23 = vector.broadcast %22 : f32 to vector<2x2x128xf32>
    %24 = arith.mulf %7, %23 : vector<2x2x128xf32>
    %25 = arith.addf %21, %24 : vector<2x2x128xf32>
    %c0_21 = arith.constant 0 : index
    %c0_22 = arith.constant 0 : index
    %c0_23 = arith.constant 0 : index
    %c0_24 = arith.constant 0 : index
    %26 = vector.load %arg5[%c0_21, %c0_22, %c0_23, %c0_24] : memref<2x3x2x128xf32, #tpu.memory_space<vmem>>, vector<2x1x2x128xf32>
    %27 = vector.shape_cast %26 : vector<2x1x2x128xf32> to vector<2x2x128xf32>
    %28 = vector.shape_cast %25 : vector<2x2x128xf32> to vector<2x1x2x128xf32>
    tpu.vector_store %arg5[%c0_21, %c0_22, %c0_23, %c0_24], %28 {strides = array<i32>} : memref<2x3x2x128xf32, #tpu.memory_space<vmem>>, vector<2x1x2x128xf32>,
    %c1_25 = arith.constant 1 : index
    %c0_26 = arith.constant 0 : index
    %29 = memref.load %arg3[%c1_25, %c0_26] : memref<3x4xf32, #tpu.memory_space<smem>>
    %30 = vector.broadcast %29 : f32 to vector<2x2x128xf32>
    %31 = arith.mulf %1, %30 : vector<2x2x128xf32>
    %c1_27 = arith.constant 1 : index
    %32 = memref.load %arg4[%c1_27] : memref<3xf32, #tpu.memory_space<smem>>
    %33 = vector.broadcast %32 : f32 to vector<2x2x128xf32>
    %34 = arith.addf %31, %33 : vector<2x2x128xf32>
    %c1_28 = arith.constant 1 : index
    %c1_29 = arith.constant 1 : index
    %35 = memref.load %arg3[%c1_28, %c1_29] : memref<3x4xf32, #tpu.memory_space<smem>>
    %36 = vector.broadcast %35 : f32 to vector<2x2x128xf32>
    %37 = arith.mulf %3, %36 : vector<2x2x128xf32>
    %38 = arith.addf %34, %37 : vector<2x2x128xf32>
    %c1_30 = arith.constant 1 : index
    %c2_31 = arith.constant 2 : index
    %39 = memref.load %arg3[%c1_30, %c2_31] : memref<3x4xf32, #tpu.memory_space<smem>>
    %40 = vector.broadcast %39 : f32 to vector<2x2x128xf32>
    %41 = arith.mulf %5, %40 : vector<2x2x128xf32>
    %42 = arith.addf %38, %41 : vector<2x2x128xf32>
    %c1_32 = arith.constant 1 : index
    %c3_33 = arith.constant 3 : index
    %43 = memref.load %arg3[%c1_32, %c3_33] : memref<3x4xf32, #tpu.memory_space<smem>>
    %44 = vector.broadcast %43 : f32 to vector<2x2x128xf32>
    %45 = arith.mulf %7, %44 : vector<2x2x128xf32>
    %46 = arith.addf %42, %45 : vector<2x2x128xf32>
    %c0_34 = arith.constant 0 : index
    %c1_35 = arith.constant 1 : index
    %c0_36 = arith.constant 0 : index
    %c0_37 = arith.constant 0 : index
    %47 = vector.load %arg5[%c0_34, %c1_35, %c0_36, %c0_37] : memref<2x3x2x128xf32, #tpu.memory_space<vmem>>, vector<2x1x2x128xf32>
    %48 = vector.shape_cast %47 : vector<2x1x2x128xf32> to vector<2x2x128xf32>
    %49 = vector.shape_cast %46 : vector<2x2x128xf32> to vector<2x1x2x128xf32>
    tpu.vector_store %arg5[%c0_34, %c1_35, %c0_36, %c0_37], %49 {strides = array<i32>} : memref<2x3x2x128xf32, #tpu.memory_space<vmem>>, vector<2x1x2x128xf32>,
    %c2_38 = arith.constant 2 : index
    %c0_39 = arith.constant 0 : index
    %50 = memref.load %arg3[%c2_38, %c0_39] : memref<3x4xf32, #tpu.memory_space<smem>>
    %51 = vector.broadcast %50 : f32 to vector<2x2x128xf32>
    %52 = arith.mulf %1, %51 : vector<2x2x128xf32>
    %c2_40 = arith.constant 2 : index
    %53 = memref.load %arg4[%c2_40] : memref<3xf32, #tpu.memory_space<smem>>
    %54 = vector.broadcast %53 : f32 to vector<2x2x128xf32>
    %55 = arith.addf %52, %54 : vector<2x2x128xf32>
    %c2_41 = arith.constant 2 : index
    %c1_42 = arith.constant 1 : index
    %56 = memref.load %arg3[%c2_41, %c1_42] : memref<3x4xf32, #tpu.memory_space<smem>>
    %57 = vector.broadcast %56 : f32 to vector<2x2x128xf32>
    %58 = arith.mulf %3, %57 : vector<2x2x128xf32>
    %59 = arith.addf %55, %58 : vector<2x2x128xf32>
    %c2_43 = arith.constant 2 : index
    %c2_44 = arith.constant 2 : index
    %60 = memref.load %arg3[%c2_43, %c2_44] : memref<3x4xf32, #tpu.memory_space<smem>>
    %61 = vector.broadcast %60 : f32 to vector<2x2x128xf32>
    %62 = arith.mulf %5, %61 : vector<2x2x128xf32>
    %63 = arith.addf %59, %62 : vector<2x2x128xf32>
    %c2_45 = arith.constant 2 : index
    %c3_46 = arith.constant 3 : index
    %64 = memref.load %arg3[%c2_45, %c3_46] : memref<3x4xf32, #tpu.memory_space<smem>>
    %65 = vector.broadcast %64 : f32 to vector<2x2x128xf32>
    %66 = arith.mulf %7, %65 : vector<2x2x128xf32>
    %67 = arith.addf %63, %66 : vector<2x2x128xf32>
    %c0_47 = arith.constant 0 : index
    %c2_48 = arith.constant 2 : index
    %c0_49 = arith.constant 0 : index
    %c0_50 = arith.constant 0 : index
    %68 = vector.load %arg5[%c0_47, %c2_48, %c0_49, %c0_50] : memref<2x3x2x128xf32, #tpu.memory_space<vmem>>, vector<2x1x2x128xf32>
    %69 = vector.shape_cast %68 : vector<2x1x2x128xf32> to vector<2x2x128xf32>
    %70 = vector.shape_cast %67 : vector<2x2x128xf32> to vector<2x1x2x128xf32>
    tpu.vector_store %arg5[%c0_47, %c2_48, %c0_49, %c0_50], %70 {strides = array<i32>} : memref<2x3x2x128xf32, #tpu.memory_space<vmem>>, vector<2x1x2x128xf32>,
    return
  }
  func.func @transform_0(%arg0: i32, %arg1: i32) -> (i32, i32, i32, i32) {
    %c0_i32 = arith.constant 0 : i32
    %c0_i32_0 = arith.constant 0 : i32
    %c0_i32_1 = arith.constant 0 : i32
    return %arg0, %c0_i32, %arg1, %c0_i32_0 : i32, i32, i32, i32
  }
  func.func @transform_1(%arg0: i32, %arg1: i32) -> (i32, i32) {
    %c0_i32 = arith.constant 0 : i32
    %c0_i32_0 = arith.constant 0 : i32
    %c0_i32_1 = arith.constant 0 : i32
    return %c0_i32, %c0_i32_0 : i32, i32
  }
  func.func @transform_2(%arg0: i32, %arg1: i32) -> i32 {
    %c0_i32 = arith.constant 0 : i32
    %c0_i32_0 = arith.constant 0 : i32
    return %c0_i32 : i32
  }
  func.func @transform_3(%arg0: i32, %arg1: i32) -> (i32, i32, i32, i32) {
    %c0_i32 = arith.constant 0 : i32
    %c0_i32_0 = arith.constant 0 : i32
    %c0_i32_1 = arith.constant 0 : i32
    return %arg0, %c0_i32, %arg1, %c0_i32_0 : i32, i32, i32, i32
  }
}

</mosaic_0001>

<bundles_post_ra>
// kernel: tpu_custom_call.1
= control target key start
LH: loop header
LB: loop body
LE: loop exit
PB: predicated region body
PF: predicated region fallthrough
CT: control target
= control target key end

     0   :  { %8 = vsyncpa [#allocation3], 0  ;;  %s351_s0 = inlined_call_operand.hbm [shape: f32[2,4,2,128], index: 0, kind: input, shape index: {}]   ;;  %s352_s1 = inlined_call_operand.hbm [shape: f32[3,4], index: 1, kind: input, shape index: {}]   ;;  %s353_s2 = inlined_call_operand.vmem [shape: f32[3], index: 2, kind: input, shape index: {}]   ;;  %s354_s3 = inlined_call_operand.hbm [shape: f32[2,3,2,128], index: 3, kind: output, shape index: {}]  }
   0x1   :  { %9 = vsyncpa [#allocation5], 0 }
   0x2   :  { %10 = vsyncpa [#allocation6], 0 }
   0x3   :  { %11 = vsyncpa [#allocation4], 0  ;;  %s255_s12 = smov [#allocation2]  }
   0x4   :  { %s17_s13 = sshll.u32 %s255_s12, 4  ;;  %s18_s13 = int_to_ptr.vmem [resolvable:$true] %s17_s13 }
   0x5   :  { %s195_s14 = scalar_lea.vmem %s18_s13, 256  ;;  %p200_p1 = scmp.lt.s32.totalorder %s18_s13, %s18_s13 }
   0x6   :  { %p196_p0 = scmp.ne.s32.totalorder %s18_s13, %s195_s14  ;;  %p201_p2 = scmp.lt.s32.totalorder %s195_s14, %s195_s14 }
   0x8   :  { %p202_p3 = por %p201_p2, %p200_p1 }
   0xa   :  { %p203_p4 = pnand %p202_p3, %p196_p0 }
   0xc   :  { %206 = shalt.err (!%p203_p4)
}
   0xd   :  { %s256_s15 = smov 32   ;;  %s257_s16 = smov 2  }
   0xe   :  { %23 = dma.hbm_to_vmem [thread:$0]  %s351_s0, 256, %s18_s13, [#allocation3], %s256_s15, %s256_s15, %s257_s16  }
   0xf   :  { %s258_s19 = smov [#allocation7]   ;;  %s38_s24 = sshll.u32 %s353_s2, 4  ;;  %s39_s24 = int_to_ptr.vmem [resolvable:$true] %s38_s24 }
  0x10   :  { %31 = dma.hbm_to_smem %s352_s1, 64, %s258_s19, [#allocation5]  }
  0x11   :  { %s215_s25 = scalar_lea.vmem %s39_s24, 16  ;;  %p220_p6 = scmp.lt.s32.totalorder %s39_s24, %s39_s24 }
  0x12   :  { %p216_p5 = scmp.ne.s32.totalorder %s39_s24, %s215_s25  ;;  %p221_p7 = scmp.lt.s32.totalorder %s215_s25, %s215_s25 }
  0x14   :  { %p222_p8 = por %p221_p7, %p220_p6 }
  0x16   :  { %p223_p9 = pnand %p222_p8, %p216_p5 }
  0x18   :  { %226 = shalt.err (!%p223_p9)
}
  0x19   :  { %s259_s26 = smov [#allocation8]  }
  0x1a   :  { %41 = dma.vmem_to_smem %s39_s24, 16, %s259_s26, [#allocation6]  }
  0x1b   :  { %247 = dma.done.wait [#allocation3], 256  }
  0x1c   :  { %248 = vsyncadd [#allocation3], 4294967040 }
  0x1d   :  { %249 = dma.done.wait [#allocation5], 64  }
  0x1e   :  { %250 = vsyncadd [#allocation5], 4294967232 }
  0x1f   :  { %251 = dma.done.wait [#allocation6], 16  }
  0x20   :  { %252 = vsyncadd [#allocation6], 4294967280 }
  0x21   :  { %51 = sfence }
  0x22   :  { %s63_s0 = sld [smem:[#allocation7]]  ;;  %v52_v0 = vld [vmem:[#allocation2] sm:$0x3]  ;;  %v293_v1 = vld [vmem:[#allocation2 + $0x8] sm:$0x3]  ;;  %s260_s12 = smov [#allocation9]  }
  0x23   :  { %s67_s1 = sld [smem:[#allocation8]]  ;;  %v55_v2 = vld [vmem:[#allocation2 + $0x2] sm:$0x3]  ;;  %v297_v3 = vld [vmem:[#allocation2 + $0x4] sm:$0x3]  ;;  %s154_s13 = sshll.u32 %s260_s12, 4  ;;  %s155_s13 = int_to_ptr.vmem [resolvable:$true] %s154_s13 }
  0x24   :  { %s168_s2 = sld [smem:[#allocation7 + $0x1]]  ;;  %v56_v7 = vld [vmem:[#allocation2 + $0xa] sm:$0x3]  ;;  %v301_v8 = vld [vmem:[#allocation2 + $0xc] sm:$0x3]  ;;  %s227_s14 = scalar_lea.vmem %s155_s13, 192 }
  0x25   :  { %s169_s27 = sld [smem:[#allocation7 + $0x2]]  ;;  %v306_v10 = vld [vmem:[#allocation2 + $0x6] sm:$0x3]  ;;  %v308_v12 = vld [vmem:[#allocation2 + $0xe] sm:$0x3]  ;;  %p228_p10 = scmp.ne.s32.totalorder %s155_s13, %s227_s14 }
  0x26   :  { %s170_s28 = sld [smem:[#allocation7 + $0x3]]  ;;  %p232_p11 = scmp.lt.s32.totalorder %s155_s13, %s155_s13 }
  0x27   :  { %s295_s29 = sld [smem:[#allocation7 + $0x80]]  ;;  %p233_p12 = scmp.lt.s32.totalorder %s227_s14, %s227_s14 }
  0x28   :  { %v64_v4 = vstv %s63_s0  ;;  %s299_s30 = sld [smem:[#allocation8 + $0x1]] }
  0x29   :  { %v65_v5 = vmul.f32 %v64_v4, %v52_v0  ;;  %v68_v6 = vstv %s67_s1  ;;  %v66_v9 = vmul.f32 %v64_v4, %v293_v1  ;;  %s304_s4 = sld [smem:[#allocation7 + $0x81]]  ;;  %p234_p13 = por %p233_p12, %p232_p11 }
  0x2a   :  { %v72_v11 = vstv %s168_s2  ;;  %s310_s5 = sld [smem:[#allocation7 + $0x82]] }
  0x2b   :  { %v69_v13 = vadd.f32 %v68_v6, %v65_v5  ;;  %v73_v14 = vmul.f32 %v72_v11, %v55_v2  ;;  %v78_v15 = vstv %s169_s27  ;;  %v70_v16 = vadd.f32 %v68_v6, %v66_v9  ;;  %s312_s6 = sld [smem:[#allocation7 + $0x83]]  ;;  %p235_p0 = pnand %p234_p13, %p228_p10 }
  0x2c   :  { %v79_v17 = vmul.f32 %v78_v15, %v297_v3  ;;  %v84_v18 = vstv %s170_s28  ;;  %v74_v19 = vmul.f32 %v72_v11, %v56_v7  ;;  %v80_v20 = vmul.f32 %v78_v15, %v301_v8  ;;  %s316_s7 = sld [smem:[#allocation7 + $0x100]] }
  0x2d   :  { %v75_v21 = vadd.f32 %v73_v14, %v69_v13  ;;  %v85_v22 = vmul.f32 %v84_v18, %v306_v10  ;;  %v86_v23 = vmul.f32 %v84_v18, %v308_v12  ;;  %v92_v24 = vstv %s295_s29  ;;  %s321_s8 = sld [smem:[#allocation8 + $0x2]] }
  0x2e   :  { %v76_v25 = vadd.f32 %v74_v19, %v70_v16  ;;  %v93_v26 = vmul.f32 %v92_v24, %v52_v0  ;;  %v96_v27 = vstv %s299_s30  ;;  %v94_v28 = vmul.f32 %v92_v24, %v293_v1  ;;  %s178_s9 = sld [smem:[#allocation7 + $0x101]] }
  0x2f   :  { %v81_v29 = vadd.f32 %v79_v17, %v75_v21  ;;  %v100_v30 = vstv %s304_s4  ;;  %s326_s10 = sld [smem:[#allocation7 + $0x102]] }
  0x30   :  { %v82_v31 = vadd.f32 %v80_v20, %v76_v25  ;;  %v97_v32 = vadd.f32 %v96_v27, %v93_v26  ;;  %v101_v33 = vmul.f32 %v100_v30, %v55_v2  ;;  %v106_v34 = vstv %s310_s5  ;;  %s329_s11 = sld [smem:[#allocation7 + $0x103]] }
  0x31   :  { %v87_v35 = vadd.f32 %v85_v22, %v81_v29  ;;  %v107_v36 = vmul.f32 %v106_v34, %v297_v3  ;;  %v112_v37 = vstv %s312_s6  ;;  %v98_v38 = vadd.f32 %v96_v27, %v94_v28 }
  0x32   :  { %v88_v39 = vadd.f32 %v86_v23, %v82_v31  ;;  %v103_v40 = vadd.f32 %v101_v33, %v97_v32  ;;  %v113_v41 = vmul.f32 %v112_v37, %v306_v10  ;;  %v102_v42 = vmul.f32 %v100_v30, %v56_v7 }
  0x33   :  { %89 = vst [vmem:[#allocation9] sm:$0x3] %v87_v35  ;;  %v108_v43 = vmul.f32 %v106_v34, %v301_v8  ;;  %v114_v44 = vmul.f32 %v112_v37, %v308_v12  ;;  %v121_v45 = vstv %s316_s7  ;;  %v125_v46 = vstv %s321_s8 }
  0x34   :  { %90 = vst [vmem:[#allocation9 + $0x6] sm:$0x3] %v88_v39  ;;  %v109_v47 = vadd.f32 %v107_v36, %v103_v40  ;;  %v104_v48 = vadd.f32 %v102_v42, %v98_v38  ;;  %v122_v49 = vmul.f32 %v121_v45, %v52_v0  ;;  %v129_v50 = vstv %s178_s9 }
  0x35   :  { %v130_v51 = vmul.f32 %v129_v50, %v55_v2  ;;  %v135_v52 = vstv %s326_s10  ;;  %v123_v53 = vmul.f32 %v121_v45, %v293_v1  ;;  %v131_v54 = vmul.f32 %v129_v50, %v56_v7 }
  0x36   :  { %v115_v55 = vadd.f32 %v113_v41, %v109_v47  ;;  %v110_v56 = vadd.f32 %v108_v43, %v104_v48  ;;  %v126_v57 = vadd.f32 %v125_v46, %v122_v49  ;;  %v136_v58 = vmul.f32 %v135_v52, %v297_v3 }
  0x37   :  { %v141_v59 = vstv %s329_s11  ;;  %v127_v60 = vadd.f32 %v125_v46, %v123_v53  ;;  %v137_v61 = vmul.f32 %v135_v52, %v301_v8 }
  0x38   :  { %118 = vst [vmem:[#allocation9 + $0x2] sm:$0x3] %v115_v55  ;;  %v116_v62 = vadd.f32 %v114_v44, %v110_v56  ;;  %v132_v63 = vadd.f32 %v130_v51, %v126_v57  ;;  %v142_v0 = vmul.f32 %v141_v59, %v306_v10  ;;  %v143_v2 = vmul.f32 %v141_v59, %v308_v12 }
  0x39   :  { %v133_v4 = vadd.f32 %v131_v54, %v127_v60 }
  0x3a   :  { %119 = vst [vmem:[#allocation9 + $0x8] sm:$0x3] %v116_v62  ;;  %v138_v1 = vadd.f32 %v136_v58, %v132_v63 }
  0x3b   :  { %v139_v5 = vadd.f32 %v137_v61, %v133_v4 }
  0x3c   :  { %v144_v6 = vadd.f32 %v142_v0, %v138_v1 }
  0x3d   :  { %v145_v7 = vadd.f32 %v143_v2, %v139_v5 }
  0x3e   :  { %147 = vst [vmem:[#allocation9 + $0x4] sm:$0x3] %v144_v6 }
  0x3f   :  { %148 = vst [vmem:[#allocation9 + $0xa] sm:$0x3] %v145_v7 }
  0x40   :  { %238 = shalt.err (!%p235_p0)
}
  0x41   :  { %160 = dma.vmem_to_hbm [thread:$0]  %s155_s13, 192, %s354_s3, [#allocation4], %s256_s15, %s256_s15, %s257_s16  }
  0x42   :  { %253 = dma.done.wait [#allocation4], 192  }
  0x43   :  { %254 = vsyncadd [#allocation4], 4294967104 }
  0x44   :  { %164 = vsyncpa [#allocation3], 1 }
  0x45   :  { %165 = vsyncpa [#allocation4], 1 }
  0x46   :  { %166 = vsyncpa [#allocation5], 1 }
  0x47   :  { %167 = vsyncpa [#allocation6], 1 }

</bundles_post_ra>
